<compile_context>
chip_gen: v6e
topology: v6e:2x2x1
jax: 0.10.0
libtpu: 0.0.40
codegen_flags: <defaults>
</compile_context>

<pallas_src>
import math
import functools

import numpy as np
import jax
import jax.numpy as jnp
from jax import lax
from jax.experimental import pallas as pl
from jax.experimental.pallas import tpu as pltpu


# ---------------------------------------------------------------------------
# Kernel
# ---------------------------------------------------------------------------
def _attn_kernel(*refs, has_mask, causal, kv_len, scale, mm_dtype, exp_dtype):
    """Flash-attention style online-softmax kernel.

    Grid: (batch_blocks, q_blocks, kv_blocks); kv is the innermost reduction
    axis.  Refs (in order):
      q (TB,TQ,Dp), k (TB,TKV,Dp), v (TB,TKV,Dp), [mask (1|TB,TQ,TKV) int8],
      o (TB,TQ,Dp);
    scratch: qs (TB,TQ,Dp) mm_dtype, m (TB,TQ,1) f32, l (TB,TQ,1) f32,
             acc (TB,TQ,Dp) f32.
    """
    if has_mask:
        q_ref, k_ref, v_ref, mask_ref, o_ref, qs_sc, m_sc, l_sc, acc_sc = refs
    else:
        q_ref, k_ref, v_ref, o_ref, qs_sc, m_sc, l_sc, acc_sc = refs
        mask_ref = None

    qi = pl.program_id(1)
    ki = pl.program_id(2)
    tq = q_ref.shape[1]
    tkv = k_ref.shape[1]

    @pl.when(ki == 0)
    def _init():
        # Scale q once per (batch, q) block (TQ*Dp muls) instead of scaling
        # the TQ*TKV score tile every kv step; cast to the MXU input dtype.
        qs_sc[...] = (q_ref[...].astype(jnp.float32)
                      * jnp.float32(scale)).astype(mm_dtype)
        m_sc[...] = jnp.full(m_sc.shape, -jnp.inf, dtype=jnp.float32)
        l_sc[...] = jnp.zeros(l_sc.shape, dtype=jnp.float32)
        acc_sc[...] = jnp.zeros(acc_sc.shape, dtype=jnp.float32)

    # q_scaled @ k^T: contract the last dim of both operands (no transpose of
    # k is materialized); MXU accumulates in f32.
    s = lax.dot_general(
        qs_sc[...], k_ref[...],
        dimension_numbers=(((2,), (2,)), ((0,), (0,))),
        preferred_element_type=jnp.float32,
    )

    if causal:
        # Lower-triangular mask generated in-kernel from iota — nothing is
        # streamed from HBM.  Fill value 1e-9 matches the PyTorch reference
        # (tiny positive masked_fill, NOT -inf).
        row = lax.broadcasted_iota(jnp.int32, (1, tq, tkv), 1) + qi * tq
        col = lax.broadcasted_iota(jnp.int32, (1, tq, tkv), 2) + ki * tkv
        s = jnp.where(row >= col, s, jnp.float32(1e-9))
    elif mask_ref is not None:
        # masked_fill(scores, mask == 0, 1e-9); broadcasts over TB when the
        # mask is shared across the batch.
        s = jnp.where(mask_ref[...] == 0, jnp.float32(1e-9), s)

    if kv_len is not None:
        # Keys created by wrapper-side padding of Sk: exclude them entirely.
        col = lax.broadcasted_iota(jnp.int32, (1, tq, tkv), 2) + ki * tkv
        s = jnp.where(col < kv_len, s, jnp.float32(-1e30))

    # Online softmax update (running stats and accumulator in f32).
    m_prev = m_sc[...]
    m_new = jnp.maximum(m_prev, jnp.max(s, axis=-1, keepdims=True))
    alpha = jnp.exp(m_prev - m_new)
    p = jnp.exp((s - m_new).astype(exp_dtype))          # bf16 EUP on v6e/v7x
    l_sc[...] = alpha * l_sc[...] + jnp.sum(p.astype(jnp.float32),
                                            axis=-1, keepdims=True)
    acc_sc[...] = alpha * acc_sc[...] + lax.dot_general(
        p.astype(mm_dtype), v_ref[...],
        dimension_numbers=(((2,), (1,)), ((0,), (0,))),
        preferred_element_type=jnp.float32,
    )
    m_sc[...] = m_new

    @pl.when(ki == pl.num_programs(2) - 1)
    def _finalize():
        inv_l = pl.reciprocal(l_sc[...], approx=True)   # EUP vrcp (free slot)
        o_ref[...] = (acc_sc[...] * inv_l).astype(o_ref.dtype)


# ---------------------------------------------------------------------------
# pallas_call wrapper
# ---------------------------------------------------------------------------
def _make_kv_spec_builder(kv_buffers):
    """BlockSpec builder with optional deeper pipelining on streamed inputs."""
    def build(shape, index_map):
        if kv_buffers > 2 and hasattr(pl, "Buffered"):
            try:
                return pl.BlockSpec(shape, index_map,
                                    pipeline_mode=pl.Buffered(kv_buffers))
            except TypeError:      # older jax without pipeline_mode
                pass
        return pl.BlockSpec(shape, index_map)
    return build


def _attention_pallas(q, k, v, mask, *, tb, tq, tkv, causal, kv_len, scale,
                      mm_dtype, exp_dtype, out_dtype, vmem_limit, kv_buffers):
    B, Sq, Dp = q.shape
    Sk = k.shape[1]
    grid = (B // tb, Sq // tq, Sk // tkv)
    has_mask = mask is not None
    kv_spec = _make_kv_spec_builder(kv_buffers)

    in_specs = [
        pl.BlockSpec((tb, tq, Dp), lambda b, qi, ki: (b, qi, 0)),   # q
        kv_spec((tb, tkv, Dp), lambda b, qi, ki: (b, ki, 0)),       # k
        kv_spec((tb, tkv, Dp), lambda b, qi, ki: (b, ki, 0)),       # v
    ]
    args = [q, k, v]
    if has_mask:
        if mask.shape[0] == B:
            in_specs.append(kv_spec((tb, tq, tkv), lambda b, qi, ki: (b, qi, ki)))
        else:   # batch-shared mask: broadcast in-kernel via index_map
            in_specs.append(kv_spec((1, tq, tkv), lambda b, qi, ki: (0, qi, ki)))
        args.append(mask)

    kernel = functools.partial(
        _attn_kernel, has_mask=has_mask, causal=causal, kv_len=kv_len,
        scale=scale, mm_dtype=mm_dtype, exp_dtype=exp_dtype)

    return pl.pallas_call(
        kernel,
        out_shape=jax.ShapeDtypeStruct((B, Sq, Dp), out_dtype),
        grid_spec=pltpu.PrefetchScalarGridSpec(
            num_scalar_prefetch=0,
            grid=grid,
            in_specs=in_specs,
            out_specs=pl.BlockSpec((tb, tq, Dp), lambda b, qi, ki: (b, qi, 0)),
            scratch_shapes=[
                pltpu.VMEM((tb, tq, Dp), mm_dtype),     # scaled q (cached)
                pltpu.VMEM((tb, tq, 1), jnp.float32),   # running max
                pltpu.VMEM((tb, tq, 1), jnp.float32),   # running sum
                pltpu.VMEM((tb, tq, Dp), jnp.float32),  # f32 output accumulator
            ],
        ),
        compiler_params=pltpu.CompilerParams(
            dimension_semantics=("parallel", "parallel", "arbitrary"),
            vmem_limit_bytes=vmem_limit,
        ),
    )(*args)


# ---------------------------------------------------------------------------
# Generation-aware planning
# ---------------------------------------------------------------------------
def _round_up(x, m):
    return -(-x // m) * m


def _tpu_generation():
    try:
        kind = jax.devices()[0].device_kind.lower()
    except Exception:
        return "unknown"
    for g in ("v7", "v6", "v5"):
        if g in kind:
            return g
    return "unknown"


def _plan(B, Sq, Sk, D, *, work_itemsize, out_itemsize, has_mask):
    gen = _tpu_generation()
    if gen in ("v5", "v6"):             # 128 MiB physical VMEM, 1 TC/chip
        vmem_phys, step_budget = 128 << 20, 20 << 20
        tq_max, tkv_max, two_cores = 512, 512, False
    elif gen == "v7":                   # 64 MiB physical VMEM, 2 TC/chip
        vmem_phys, step_budget = 64 << 20, 8 << 20
        tq_max, tkv_max, two_cores = 256, 512, True
    else:                               # unknown: be conservative
        vmem_phys, step_budget = 64 << 20, 8 << 20
        tq_max, tkv_max, two_cores = 256, 512, False

    # Lane-dense head dim: last dim -> full 128 lanes / full MXU depth.
    d_pad = _round_up(max(D, 128), 128)
    # Pad sequences to 128-multiples only when tiling is needed; tiny
    # sequences keep full-extent (== array dim) blocks.
    sq_pad = Sq if Sq <= 128 else _round_up(Sq, 128)
    sk_pad = Sk if Sk <= 128 else _round_up(Sk, 128)

    def pick_tile(s_pad, cap):
        if s_pad <= 128:
            return s_pad
        for c in (cap, 256, 128):
            if c <= cap and s_pad % c == 0:
                return c
        return 128

    tq = pick_tile(sq_pad, tq_max)
    tkv = pick_tile(sk_pad, tkv_max)

    def step_bytes(tb_, tq_, tkv_):
        nbuf = 3 if (sk_pad // tkv_) >= 3 else 2          # k/v/mask pipeline depth
        stream = 2 * tb_ * tkv_ * d_pad * work_itemsize   # k + v blocks
        if has_mask:
            stream += tb_ * tq_ * tkv_                    # int8 mask block
        fixed = (2 * tb_ * tq_ * d_pad * work_itemsize    # q (double-buffered)
                 + 2 * tb_ * tq_ * d_pad * out_itemsize   # out (double-buffered)
                 + tb_ * tq_ * d_pad * (4 + work_itemsize)  # acc + scaled-q scratch
                 + 2 * tb_ * tq_ * 4                      # m, l scratch
                 + 2 * tb_ * tq_ * tkv_ * 4)              # s, p intermediates
        return nbuf * stream + fixed

    # Shrink tiles first if even a single batch exceeds the budget.
    while step_bytes(1, tq, tkv) > step_budget and tkv > 128:
        tkv = max(128, tkv // 2)
    while step_bytes(1, tq, tkv) > step_budget and tq > 128:
        tq = max(128, tq // 2)

    # Fold as many batches per step as the budget allows (amortizes the
    # ~0.35us/step pipeline overhead for tiny tiles).
    tb = 1
    for cand in range(B, 0, -1):
        if B % cand == 0 and step_bytes(cand, tq, tkv) <= step_budget:
            tb = cand
            break

    # v7x: keep both TensorCores busy — the "parallel" part of the grid
    # ((B//tb) * (Sq//tq)) needs at least 2 blocks to shard across cores.
    if two_cores:
        while tb > 1 and (B // tb) * (sq_pad // tq) < 2:
            tb -= 1
            while tb > 1 and B % tb:
                tb -= 1

    need = step_bytes(tb, tq, tkv) + (4 << 20)            # + headroom
    vmem_limit = int(min(max(need, 16 << 20), (vmem_phys * 3) // 4))
    kv_buffers = 3 if (sk_pad // tkv) >= 3 else 2
    bf16_exp = gen in ("v6", "v7")                        # no bf16 EUP on v5e

    return dict(d_pad=d_pad, sq_pad=sq_pad, sk_pad=sk_pad, tb=tb, tq=tq,
                tkv=tkv, vmem_limit=vmem_limit, kv_buffers=kv_buffers,
                bf16_exp=bf16_exp)


# ---------------------------------------------------------------------------
# Jitted forward (padding / casting / kernel / un-padding)
# ---------------------------------------------------------------------------
@functools.partial(jax.jit, static_argnames=(
    "tb", "tq", "tkv", "d_pad", "sq_pad", "sk_pad", "causal", "use_bf16",
    "bf16_exp", "scale", "vmem_limit", "kv_buffers"))
def _forward(q, k, v, mask, *, tb, tq, tkv, d_pad, sq_pad, sk_pad, causal,
             use_bf16, bf16_exp, scale, vmem_limit, kv_buffers):
    out_dtype = q.dtype
    B, Sq, D = q.shape
    Sk = k.shape[1]
    work_dtype = jnp.bfloat16 if use_bf16 else q.dtype
    exp_dtype = jnp.bfloat16 if (use_bf16 and bf16_exp) else jnp.float32

    def prep(x, s_pad):
        # Zero-pad seq / lane dims and cast to the bf16 working dtype
        # (halves K/V HBM traffic for f32 inputs).
        s, d = x.shape[1], x.shape[2]
        if s_pad != s or d_pad != d:
            x = jnp.pad(x, ((0, 0), (0, s_pad - s), (0, d_pad - d)))
        return x.astype(work_dtype)

    qp, kp, vp = prep(q, sq_pad), prep(k, sk_pad), prep(v, sk_pad)

    mask_arg = None
    if (mask is not None) and (not causal):
        m = (mask != 0).astype(jnp.int8)          # 4x less HBM than int32
        if sq_pad != Sq or sk_pad != Sk:
            m = jnp.pad(m, ((0, 0), (0, sq_pad - Sq), (0, sk_pad - Sk)))
        mask_arg = m

    kv_len = Sk if sk_pad != Sk else None         # exclude padded keys in-kernel

    out = _attention_pallas(
        qp, kp, vp, mask_arg, tb=tb, tq=tq, tkv=tkv, causal=causal,
        kv_len=kv_len, scale=scale, mm_dtype=work_dtype, exp_dtype=exp_dtype,
        out_dtype=out_dtype, vmem_limit=vmem_limit, kv_buffers=kv_buffers)
    return out[:, :Sq, :D]


# ---------------------------------------------------------------------------
# Public entry point — matches SelfAttention.forward(k, q, v, mask)
# ---------------------------------------------------------------------------
def self_attention(k, q, v, mask=None):
    k = jnp.asarray(k)
    q = jnp.asarray(q)
    v = jnp.asarray(v)
    B, Sk, D = k.shape
    Sq = q.shape[1]
    scale = 1.0 / math.sqrt(D)                    # dim_k = k.size(-1), pre-pad
    use_bf16 = (q.dtype == jnp.float32) or (q.dtype == jnp.bfloat16)

    causal = False
    mask_proc = None
    if mask is not None:
        mask = jnp.asarray(mask)
        if mask.ndim == 2:
            mask = mask[None]
        if mask.shape not in ((1, Sq, Sk), (B, Sq, Sk)):
            mask = jnp.broadcast_to(mask, (B, Sq, Sk))
        # Structured-mask fast path: a concrete lower-triangular mask is
        # regenerated in-kernel from iota instead of being streamed from HBM.
        try:
            m_np = np.asarray(mask) != 0
            tril = np.tril(np.ones((Sq, Sk), dtype=bool))[None]
            causal = bool((m_np == tril).all())
        except Exception:        # traced mask — cannot inspect; stream it
            causal = False
        if not causal:
            mask_proc = mask

    plan = _plan(B, Sq, Sk, D,
                 work_itemsize=2 if use_bf16 else q.dtype.itemsize,
                 out_itemsize=q.dtype.itemsize,
                 has_mask=mask_proc is not None)

    return _forward(q, k, v, mask_proc,
                    tb=plan["tb"], tq=plan["tq"], tkv=plan["tkv"],
                    d_pad=plan["d_pad"], sq_pad=plan["sq_pad"],
                    sk_pad=plan["sk_pad"], causal=causal,
                    use_bf16=use_bf16, bf16_exp=plan["bf16_exp"],
                    scale=scale, vmem_limit=plan["vmem_limit"],
                    kv_buffers=plan["kv_buffers"])


# ---------------------------------------------------------------------------
# Pure-JAX reference (exact f32 math) and demo
# ---------------------------------------------------------------------------
def _reference(k, q, v, mask=None):
    dim_k = k.shape[-1]
    scores = jnp.einsum("bqd,bkd->bqk", q.astype(jnp.float32),
                        k.astype(jnp.float32)) / math.sqrt(dim_k)
    if mask is not None:
        scores = jnp.where(mask == 0, 1e-9, scores)
    attn = jax.nn.softmax(scores, axis=-1)
    return jnp.einsum("bqk,bkd->bqd", attn, v.astype(jnp.float32))


if __name__ == "__main__":
    # SelfAttention has no learned parameters (__init__ is empty).
    key = jax.random.PRNGKey(0)
    kk, kq, kv_, km = jax.random.split(key, 4)

    B, S, D = 2, 8, 32  # batch=2, seq=8, hidden=32
    k = jax.random.normal(kk, (B, S, D), dtype=jnp.float32)
    q = jax.random.normal(kq, (B, S, D), dtype=jnp.float32)
    v = jax.random.normal(kv_, (B, S, D), dtype=jnp.float32)

    # Matmuls (and the exp on v6e/v7x) run in bf16 with f32 accumulation, so
    # compare against the exact f32 reference with a bf16-level tolerance.
    atol = rtol = 3e-2

    # 1) No-mask path (PyTorch `if mask:` is False when mask is None).
    out = jax.block_until_ready(self_attention(k, q, v, mask=None))
    ref = _reference(k, q, v, mask=None)
    assert out.shape == (B, S, D) and out.dtype == q.dtype
    assert jnp.allclose(out, ref, atol=atol, rtol=rtol), (
        f"no-mask mismatch, max err {jnp.max(jnp.abs(out - ref)):.4e}")

    # 2) Lower-triangular mask: detected as causal, generated in-kernel.
    mask = jnp.tril(jnp.ones((S, S), dtype=jnp.int32))
    out_m = jax.block_until_ready(self_attention(k, q, v, mask=mask))
    ref_m = _reference(k, q, v, mask=mask[None])
    assert out_m.shape == (B, S, D)
    assert jnp.allclose(out_m, ref_m, atol=atol, rtol=rtol), (
        f"causal-mask mismatch, max err {jnp.max(jnp.abs(out_m - ref_m)):.4e}")

    # 3) Arbitrary 0/1 mask: streamed as int8 blocks.
    rmask = (jax.random.uniform(km, (B, S, S)) > 0.3).astype(jnp.int32)
    out_r = jax.block_until_ready(self_attention(k, q, v, mask=rmask))
    ref_r = _reference(k, q, v, mask=rmask)
    assert jnp.allclose(out_r, ref_r, atol=atol, rtol=rtol), (
        f"random-mask mismatch, max err {jnp.max(jnp.abs(out_r - ref_r)):.4e}")

    print("KERNEL_OK")
</pallas_src>

<mosaic_0001>
module attributes {stable_mosaic.version = 11 : i64} {
  func.func @_attn_kernel(%arg0: i32, %arg1: i32, %arg2: i32, %arg3: memref<2x8x128xbf16, #tpu.memory_space<vmem>>, %arg4: memref<2x8x128xbf16, #tpu.memory_space<vmem>>, %arg5: memref<2x8x128xbf16, #tpu.memory_space<vmem>>, %arg6: memref<2x8x128xf32, #tpu.memory_space<vmem>>, %arg7: memref<2x8x128xbf16, #tpu.memory_space<vmem>>, %arg8: memref<2x8x1xf32, #tpu.memory_space<vmem>>, %arg9: memref<2x8x1xf32, #tpu.memory_space<vmem>>, %arg10: memref<2x8x128xf32, #tpu.memory_space<vmem>>) attributes {dimension_semantics = [#tpu.dimension_semantics<parallel>, #tpu.dimension_semantics<parallel>, #tpu.dimension_semantics<arbitrary>], iteration_bounds = array<i64: 1, 1, 1>, scalar_prefetch = 0 : i64, scratch_operands = 4 : i64, tpu.core_type = #tpu.core_type<tc>, window_params = [{transform_indices = @transform_0, window_bounds = array<i64: 2, 8, 128>}, {transform_indices = @transform_1, window_bounds = array<i64: 2, 8, 128>}, {transform_indices = @transform_2, window_bounds = array<i64: 2, 8, 128>}, {transform_indices = @transform_3, window_bounds = array<i64: 2, 8, 128>}]} {
    %c0_i32 = arith.constant 0 : i32
    %0 = arith.cmpi eq, %arg2, %c0_i32 : i32
    %1 = arith.extui %0 : i1 to i32
    %c0_i32_0 = arith.constant 0 : i32
    %2 = arith.cmpi ne, %1, %c0_i32_0 : i32
    scf.if %2 {
      %c0_32 = arith.constant 0 : index
      %c0_33 = arith.constant 0 : index
      %c0_34 = arith.constant 0 : index
      %33 = vector.load %arg3[%c0_32, %c0_33, %c0_34] : memref<2x8x128xbf16, #tpu.memory_space<vmem>>, vector<2x8x128xbf16>
      %34 = arith.extf %33 : vector<2x8x128xbf16> to vector<2x8x128xf32>
      %cst_35 = arith.constant 0.176776692 : f32
      %35 = vector.broadcast %cst_35 : f32 to vector<2x8x128xf32>
      %36 = arith.mulf %34, %35 : vector<2x8x128xf32>
      %37 = arith.truncf %36 : vector<2x8x128xf32> to vector<2x8x128xbf16>
      %c0_36 = arith.constant 0 : index
      %c0_37 = arith.constant 0 : index
      %c0_38 = arith.constant 0 : index
      %38 = vector.load %arg7[%c0_36, %c0_37, %c0_38] : memref<2x8x128xbf16, #tpu.memory_space<vmem>>, vector<2x8x128xbf16>
      tpu.vector_store %arg7[%c0_36, %c0_37, %c0_38], %37 {strides = array<i32>} : memref<2x8x128xbf16, #tpu.memory_space<vmem>>, vector<2x8x128xbf16>,
      %cst_39 = arith.constant 0xFF800000 : f32
      %39 = vector.broadcast %cst_39 : f32 to vector<2x8x1xf32>
      %c0_40 = arith.constant 0 : index
      %c0_41 = arith.constant 0 : index
      %c0_42 = arith.constant 0 : index
      %40 = vector.load %arg8[%c0_40, %c0_41, %c0_42] : memref<2x8x1xf32, #tpu.memory_space<vmem>>, vector<2x8x1xf32>
      tpu.vector_store %arg8[%c0_40, %c0_41, %c0_42], %39 {strides = array<i32>} : memref<2x8x1xf32, #tpu.memory_space<vmem>>, vector<2x8x1xf32>,
      %cst_43 = arith.constant 0.000000e+00 : f32
      %41 = vector.broadcast %cst_43 : f32 to vector<2x8x1xf32>
      %c0_44 = arith.constant 0 : index
      %c0_45 = arith.constant 0 : index
      %c0_46 = arith.constant 0 : index
      %42 = vector.load %arg9[%c0_44, %c0_45, %c0_46] : memref<2x8x1xf32, #tpu.memory_space<vmem>>, vector<2x8x1xf32>
      tpu.vector_store %arg9[%c0_44, %c0_45, %c0_46], %41 {strides = array<i32>} : memref<2x8x1xf32, #tpu.memory_space<vmem>>, vector<2x8x1xf32>,
      %cst_47 = arith.constant 0.000000e+00 : f32
      %43 = vector.broadcast %cst_47 : f32 to vector<2x8x128xf32>
      %c0_48 = arith.constant 0 : index
      %c0_49 = arith.constant 0 : index
      %c0_50 = arith.constant 0 : index
      %44 = vector.load %arg10[%c0_48, %c0_49, %c0_50] : memref<2x8x128xf32, #tpu.memory_space<vmem>>, vector<2x8x128xf32>
      tpu.vector_store %arg10[%c0_48, %c0_49, %c0_50], %43 {strides = array<i32>} : memref<2x8x128xf32, #tpu.memory_space<vmem>>, vector<2x8x128xf32>,
    } else {
    }
    %c0 = arith.constant 0 : index
    %c0_1 = arith.constant 0 : index
    %c0_2 = arith.constant 0 : index
    %3 = vector.load %arg7[%c0, %c0_1, %c0_2] : memref<2x8x128xbf16, #tpu.memory_space<vmem>>, vector<2x8x128xbf16>
    %c0_3 = arith.constant 0 : index
    %c0_4 = arith.constant 0 : index
    %c0_5 = arith.constant 0 : index
    %4 = vector.load %arg4[%c0_3, %c0_4, %c0_5] : memref<2x8x128xbf16, #tpu.memory_space<vmem>>, vector<2x8x128xbf16>
    %cst = arith.constant dense<0.000000e+00> : vector<2x8x8xf32>
    %5 = tpu.matmul %3, %4, %cst {dimension_numbers = #tpu.dot_dimension_numbers<[2], [2], [1], [1], [0, 0, 0, 1, 1, 1], [0], [0]>} : vector<2x8x128xbf16>, vector<2x8x128xbf16>, vector<2x8x8xf32> -> vector<2x8x8xf32>
    %c0_6 = arith.constant 0 : index
    %c0_7 = arith.constant 0 : index
    %c0_8 = arith.constant 0 : index
    %6 = vector.load %arg8[%c0_6, %c0_7, %c0_8] : memref<2x8x1xf32, #tpu.memory_space<vmem>>, vector<2x8x1xf32>
    %cst_9 = arith.constant dense<0xFF800000> : vector<2x8xf32>
    %7 = vector.multi_reduction <maximumf>, %5, %cst_9 [2] : vector<2x8x8xf32> to vector<2x8xf32>
    %8 = vector.shape_cast %7 : vector<2x8xf32> to vector<2x8x1xf32>
    %9 = arith.maximumf %6, %8 : vector<2x8x1xf32>
    %10 = arith.subf %6, %9 : vector<2x8x1xf32>
    %11 = math.exp %10 : vector<2x8x1xf32>
    %12 = vector.broadcast %9 : vector<2x8x1xf32> to vector<2x8x8xf32>
    %13 = arith.subf %5, %12 : vector<2x8x8xf32>
    %14 = math.exp %13 : vector<2x8x8xf32>
    %c0_10 = arith.constant 0 : index
    %c0_11 = arith.constant 0 : index
    %c0_12 = arith.constant 0 : index
    %15 = vector.load %arg9[%c0_10, %c0_11, %c0_12] : memref<2x8x1xf32, #tpu.memory_space<vmem>>, vector<2x8x1xf32>
    %16 = arith.mulf %11, %15 : vector<2x8x1xf32>
    %cst_13 = arith.constant dense<0.000000e+00> : vector<2x8xf32>
    %17 = vector.multi_reduction <add>, %14, %cst_13 [2] : vector<2x8x8xf32> to vector<2x8xf32>
    %18 = vector.shape_cast %17 : vector<2x8xf32> to vector<2x8x1xf32>
    %19 = arith.addf %16, %18 : vector<2x8x1xf32>
    %c0_14 = arith.constant 0 : index
    %c0_15 = arith.constant 0 : index
    %c0_16 = arith.constant 0 : index
    %20 = vector.load %arg9[%c0_14, %c0_15, %c0_16] : memref<2x8x1xf32, #tpu.memory_space<vmem>>, vector<2x8x1xf32>
    tpu.vector_store %arg9[%c0_14, %c0_15, %c0_16], %19 {strides = array<i32>} : memref<2x8x1xf32, #tpu.memory_space<vmem>>, vector<2x8x1xf32>,
    %c0_17 = arith.constant 0 : index
    %c0_18 = arith.constant 0 : index
    %c0_19 = arith.constant 0 : index
    %21 = vector.load %arg10[%c0_17, %c0_18, %c0_19] : memref<2x8x128xf32, #tpu.memory_space<vmem>>, vector<2x8x128xf32>
    %22 = vector.broadcast %11 : vector<2x8x1xf32> to vector<2x8x128xf32>
    %23 = arith.mulf %22, %21 : vector<2x8x128xf32>
    %24 = arith.truncf %14 : vector<2x8x8xf32> to vector<2x8x8xbf16>
    %c0_20 = arith.constant 0 : index
    %c0_21 = arith.constant 0 : index
    %c0_22 = arith.constant 0 : index
    %25 = vector.load %arg5[%c0_20, %c0_21, %c0_22] : memref<2x8x128xbf16, #tpu.memory_space<vmem>>, vector<2x8x128xbf16>
    %cst_23 = arith.constant dense<0.000000e+00> : vector<2x8x128xf32>
    %26 = tpu.matmul %24, %25, %cst_23 {dimension_numbers = #tpu.dot_dimension_numbers<[2], [1], [1], [2], [0, 0, 0, 1, 1, 2], [0], [0]>} : vector<2x8x8xbf16>, vector<2x8x128xbf16>, vector<2x8x128xf32> -> vector<2x8x128xf32>
    %27 = arith.addf %23, %26 : vector<2x8x128xf32>
    %c0_24 = arith.constant 0 : index
    %c0_25 = arith.constant 0 : index
    %c0_26 = arith.constant 0 : index
    %28 = vector.load %arg10[%c0_24, %c0_25, %c0_26] : memref<2x8x128xf32, #tpu.memory_space<vmem>>, vector<2x8x128xf32>
    tpu.vector_store %arg10[%c0_24, %c0_25, %c0_26], %27 {strides = array<i32>} : memref<2x8x128xf32, #tpu.memory_space<vmem>>, vector<2x8x128xf32>,
    %c0_27 = arith.constant 0 : index
    %c0_28 = arith.constant 0 : index
    %c0_29 = arith.constant 0 : index
    %29 = vector.load %arg8[%c0_27, %c0_28, %c0_29] : memref<2x8x1xf32, #tpu.memory_space<vmem>>, vector<2x8x1xf32>
    tpu.vector_store %arg8[%c0_27, %c0_28, %c0_29], %9 {strides = array<i32>} : memref<2x8x1xf32, #tpu.memory_space<vmem>>, vector<2x8x1xf32>,
    %c0_i32_30 = arith.constant 0 : i32
    %30 = arith.cmpi eq, %arg2, %c0_i32_30 : i32
    %31 = arith.extui %30 : i1 to i32
    %c0_i32_31 = arith.constant 0 : i32
    %32 = arith.cmpi ne, %31, %c0_i32_31 : i32
    scf.if %32 {
      %c0_32 = arith.constant 0 : index
      %c0_33 = arith.constant 0 : index
      %c0_34 = arith.constant 0 : index
      %33 = vector.load %arg9[%c0_32, %c0_33, %c0_34] : memref<2x8x1xf32, #tpu.memory_space<vmem>>, vector<2x8x1xf32>
      %34 = tpu.reciprocal %33 {approx = true} : vector<2x8x1xf32> -> vector<2x8x1xf32>
      %c0_35 = arith.constant 0 : index
      %c0_36 = arith.constant 0 : index
      %c0_37 = arith.constant 0 : index
      %35 = vector.load %arg10[%c0_35, %c0_36, %c0_37] : memref<2x8x128xf32, #tpu.memory_space<vmem>>, vector<2x8x128xf32>
      %36 = vector.broadcast %34 : vector<2x8x1xf32> to vector<2x8x128xf32>
      %37 = arith.mulf %35, %36 : vector<2x8x128xf32>
      %c0_38 = arith.constant 0 : index
      %c0_39 = arith.constant 0 : index
      %c0_40 = arith.constant 0 : index
      %38 = vector.load %arg6[%c0_38, %c0_39, %c0_40] : memref<2x8x128xf32, #tpu.memory_space<vmem>>, vector<2x8x128xf32>
      tpu.vector_store %arg6[%c0_38, %c0_39, %c0_40], %37 {strides = array<i32>} : memref<2x8x128xf32, #tpu.memory_space<vmem>>, vector<2x8x128xf32>,
    } else {
    }
    return
  }
  func.func @transform_0(%arg0: i32, %arg1: i32, %arg2: i32) -> (i32, i32, i32) {
    %c0_i32 = arith.constant 0 : i32
    %c0_i32_0 = arith.constant 0 : i32
    return %arg0, %arg1, %c0_i32 : i32, i32, i32
  }
  func.func @transform_1(%arg0: i32, %arg1: i32, %arg2: i32) -> (i32, i32, i32) {
    %c0_i32 = arith.constant 0 : i32
    %c0_i32_0 = arith.constant 0 : i32
    return %arg0, %arg2, %c0_i32 : i32, i32, i32
  }
  func.func @transform_2(%arg0: i32, %arg1: i32, %arg2: i32) -> (i32, i32, i32) {
    %c0_i32 = arith.constant 0 : i32
    %c0_i32_0 = arith.constant 0 : i32
    return %arg0, %arg2, %c0_i32 : i32, i32, i32
  }
  func.func @transform_3(%arg0: i32, %arg1: i32, %arg2: i32) -> (i32, i32, i32) {
    %c0_i32 = arith.constant 0 : i32
    %c0_i32_0 = arith.constant 0 : i32
    return %arg0, %arg1, %c0_i32 : i32, i32, i32
  }
}

</mosaic_0001>

<bundles_post_ra>
// kernel: _forward.1
= control target key start
LH: loop header
LB: loop body
LE: loop exit
PB: predicated region body
PF: predicated region fallthrough
CT: control target
= control target key end

     0   :  { %v411_v2 = vmov 0.0   ;;  %s470_s0 = inlined_call_operand.vmem [shape: bf16[2,8,128], index: 0, kind: input, shape index: {}]   ;;  %s471_s1 = inlined_call_operand.vmem [shape: bf16[2,8,128], index: 1, kind: input, shape index: {}]   ;;  %s472_s2 = inlined_call_operand.vmem [shape: bf16[2,8,128], index: 2, kind: input, shape index: {}]   ;;  %s473_s3 = inlined_call_operand.hbm [shape: f32[2,8,128], index: 3, kind: output, shape index: {}]  }
   0x1   :  { %v39_v0 = vld [vmem:[%s471_s1] sm:$0xf]  ;;  %v40_v1 = vld [vmem:[%s471_s1 + $0x4] sm:$0xf]  ;;  %344 = vmatprep.subr.bf16.mxu0 %v411_v2  ;;  %350 = vmatprep.subr.bf16.mxu1 %v411_v2 }
   0x2   :  { %v328_v3 = vld [vmem:[%s470_s0] sm:$0xff]  }
   0x3   :  { %8 = vsyncpa [#allocation7], 0  ;;  %345 = vmatpush3.bf16.xpose.msra.mxu0 %v39_v0  ;;  %351 = vmatpush3.bf16.xpose.msra.mxu1 %v40_v1  ;;  %v329_v4 = vunpack.c.l.bf16 %v328_v3  ;;  %v330_v5 = vunpack.c.h.bf16 %v328_v3  ;;  %vm412_vm0 = vmmov 0   ;;  %vm30_vm1 = vcmask 7168   ;;  %v185_v31 = vld [vmem:[%s472_s2] sm:$0xf] }
   0x4   :  { %346 = vmatprep.mubr.msk.bf16.mxu0 %vm412_vm0, %v411_v2  ;;  %352 = vmatprep.mubr.msk.bf16.mxu1 %vm412_vm0, %v411_v2  ;;  %v413_v11 = vmov -inf   ;;  %33 = vst.msk [vmem:[#allocation4] sm:$0xff] %vm30_vm1, %v411_v2  ;;  %34 = vst.msk [vmem:[#allocation4 + $0x8] sm:$0xff] %vm30_vm1, %v411_v2  ;;  %vm123_vm2 = vcmask 64512   ;;  %v414_v22 = vmov 0   ;;  %vm190_vm3 = vcmask 1043456  }
   0x5   :  { %v24_v6 = vmul.f32 0.17677669, %v329_v4  ;;  %v25_v7 = vmul.f32 0.17677669, %v330_v5  ;;  %356 = vmatprep.subr.bf16.mxu0 %v411_v2  ;;  %362 = vmatprep.subr.bf16.mxu1 %v411_v2  ;;  %31 = vst.msk [vmem:[#allocation3] sm:$0xff] %vm30_vm1, %v413_v11  ;;  %32 = vst.msk [vmem:[#allocation3 + $0x8] sm:$0xff] %vm30_vm1, %v413_v11 }
   0x6   :  { %375 = vset.pattern.permute.xlu1 %v414_v22  ;;  %376 = vset.pattern.permute.xlu0 %v414_v22  ;;  %v192_v32 = vsel %vm190_vm3, %v185_v31, 0  ;;  %v186_v33 = vld [vmem:[%s472_s2 + $0x4] sm:$0xf]  ;;  %s415_s2 = smov [#allocation6]  }
   0x7   :  { %v334_v8 = vpack.c.bf16 %v25_v7, %v24_v6  ;;  %v238_v34 = vsel %vm190_vm3, %v186_v33, 0  ;;  %s314_s20 = sshll.u32 %s415_s2, 4  ;;  %s315_s20 = int_to_ptr.vmem [resolvable:$true] %s314_s20 }
   0x8   :  { %s389_s21 = scalar_lea.vmem %s315_s20, 256  ;;  %p394_p1 = scmp.lt.s32.totalorder %s315_s20, %s315_s20 }
   0x9   :  { %335 = vst [vmem:[#allocation2] sm:$0xff] %v334_v8   ;;  %p390_p0 = scmp.ne.s32.totalorder %s315_s20, %s389_s21  ;;  %p395_p2 = scmp.lt.s32.totalorder %s389_s21, %s389_s21 }
   0xb   :  { %v154_v51 = vld [vmem:[#allocation4] sm:$0xff]  ;;  %v155_v54 = vld [vmem:[#allocation4 + $0x8] sm:$0xff]  ;;  %p396_p3 = por %p395_p2, %p394_p1 }
   0xc   :  { %v121_v23 = vld [vmem:[#allocation3] sm:$0xff]  ;;  %v122_v26 = vld [vmem:[#allocation3 + $0x8] sm:$0xff] }
   0xd   :  { %p397_p4 = pnand %p396_p3, %p390_p0 }
  0x10   :  { %v37_v9 = vld [vmem:[#allocation2] sm:$0xf]  ;;  %v38_v10 = vld [vmem:[#allocation2 + $0x4] sm:$0xf] }
  0x11   :  { %347 = vmatmul.mubr.bf16.vlgmr.msra.gmra.mxu0 %v37_v9  ;;  %353 = vmatmul.mubr.bf16.vlgmr.msra.gmra.mxu1 %v38_v10 }
  0x12   :  { %358 = vmatprep.mubr.msk.bf16.mxu0 %vm412_vm0, %v411_v2  ;;  %364 = vmatprep.mubr.msk.bf16.mxu1 %vm412_vm0, %v411_v2 }
  0x13   :  { %357 = vmatpush3.bf16.msra.mxu0 %v192_v32  ;;  %363 = vmatpush3.bf16.msra.mxu1 %v238_v34 }
  0xd1   :  { %v75_v12 = vpop.f32.mrf.mxu0  ;;  %v115_v13 = vpop.f32.mrf.mxu1 }
  0xd2   :  { %v124_v14 = vsel %vm123_vm2, %v75_v12, -inf  ;;  %v127_v17 = vsel %vm123_vm2, %v115_v13, -inf }
  0xd3   :  { %v354_v15 = vpop.f32.mrf.mxu1  ;;  %125 = vmax.xlane.f32.xlu0 %v124_v14  ;;  %v348_v16 = vpop.f32.mrf.mxu0 }
  0xd5   :  { %v78_v18 = vpop.f32.mrf.mxu0  ;;  %v118_v19 = vpop.f32.mrf.mxu1 }
  0xd7   :  { %v355_v20 = vpop.f32.mrf.mxu1  ;;  %128 = vmax.xlane.f32.xlu0 %v127_v17  ;;  %v349_v21 = vpop.f32.mrf.mxu0 }
 0x15c   :  { %v126_v24 = vpop.xlane.xlu0 %125 }
 0x15d   :  { %v130_v25 = vmax.f32 %v121_v23, %v126_v24 }
 0x15f   :  { %v132_v27 = vsub.f32 %v121_v23, %v130_v25  ;;  %284 = vst.msk [vmem:[#allocation3] sm:$0xff] %vm30_vm1, %v130_v25  ;;  %140 = vperm.xlu1 %375, %v130_v25  }
 0x160   :  { %v129_v28 = vpop.xlane.xlu0 %128 }
 0x161   :  { %v131_v29 = vmax.f32 %v122_v26, %v129_v28  ;;  %v134_v48 = vmul.f32 1.442695, %v132_v27 }
 0x163   :  { %v133_v30 = vsub.f32 %v122_v26, %v131_v29  ;;  %285 = vst.msk [vmem:[#allocation3 + $0x8] sm:$0xff] %vm30_vm1, %v131_v29  ;;  %145 = vperm.xlu1 %375, %v131_v29  }
 0x165   :  { %v136_v45 = vmul.f32 1.442695, %v133_v30 }
 0x1da   :  { %v141_v35 = vpop.permute.xlu1 %140 }
 0x1db   :  { %v148_v36 = vsub.f32 %v75_v12, %v141_v35 }
 0x1dd   :  { %v150_v37 = vmul.f32 1.442695, %v148_v36 }
 0x1de   :  { %v146_v38 = vpop.permute.xlu1 %145 }
 0x1df   :  { %377 = vpow2.f32 %v150_v37  ;;  %v149_v39 = vsub.f32 %v115_v13, %v146_v38 }
 0x1e1   :  { %v152_v40 = vmul.f32 1.442695, %v149_v39 }
 0x1e3   :  { %379 = vpow2.f32 %v152_v40 }
 0x1e4   :  { %381 = vpow2.f32 %v136_v45 }
 0x1e5   :  { %383 = vpow2.f32 %v134_v48 }
 0x1ec   :  { %v378_v41 = vpop.eup %377 }
 0x1ed   :  { %v158_v42 = vsel %vm123_vm2, %v378_v41, 0.0  ;;  %v183_v43 = vpack.c.bf16 %v378_v41, %v378_v41 }
 0x1ee   :  { %159 = vadd.xlane.f32.xlu0 %v158_v42 }
 0x1ef   :  { %359 = vmatmul.mubr.msk.bf16.vlgmr.msra.gmra.mxu0 %vm123_vm2, %v183_v43 }
 0x1f0   :  { %v380_v44 = vpop.eup %379 }
 0x1f1   :  { %v161_v46 = vsel %vm123_vm2, %v380_v44, 0.0  ;;  %v184_v47 = vpack.c.bf16 %v380_v44, %v380_v44  ;;  %v382_v49 = vpop.eup %381 }
 0x1f2   :  { %162 = vadd.xlane.f32.xlu1 %v161_v46  ;;  %v384_v50 = vpop.eup %383  ;;  %v157_v56 = vmul.f32 %v382_v49, %v155_v54 }
 0x1f3   :  { %365 = vmatmul.mubr.msk.bf16.vlgmr.msra.gmra.mxu1 %vm123_vm2, %v184_v47  ;;  %v156_v52 = vmul.f32 %v384_v50, %v154_v51 }
 0x203   :  { %178 = vperm.xlu1 %375, %v382_v49  }
 0x204   :  { %173 = vperm.xlu0 %376, %v384_v50  }
 0x277   :  { %v160_v53 = vpop.xlane.xlu0 %159 }
 0x278   :  { %v164_v55 = vadd.f32 %v160_v53, %v156_v52 }
 0x27a   :  { %167 = vst.msk [vmem:[#allocation4] sm:$0xff] %vm30_vm1, %v164_v55 }
 0x27b   :  { %v163_v57 = vpop.xlane.xlu1 %162 }
 0x27c   :  { %v165_v58 = vadd.f32 %v163_v57, %v157_v56 }
 0x27e   :  { %168 = vst.msk [vmem:[#allocation4 + $0x8] sm:$0xff] %vm30_vm1, %v165_v58 }
 0x27f   :  { %v174_v7 = vpop.permute.xlu0 %173  ;;  %v179_v9 = vpop.permute.xlu1 %178 }
 0x280   :  { %v181_v8 = vmul.f32 0.0, %v174_v7  ;;  %v182_v12 = vmul.f32 0.0, %v179_v9 }
 0x281   :  { %v289_v59 = vld [vmem:[#allocation4] sm:$0xff] }
 0x282   :  { %385 = vrcp.f32 %v289_v59 }
 0x285   :  { %v290_v60 = vld [vmem:[#allocation4 + $0x8] sm:$0xff] }
 0x286   :  { %387 = vrcp.f32 %v290_v60 }
 0x28f   :  { %v386_v61 = vpop.eup %385 }
 0x290   :  { %297 = vperm.xlu0 %376, %v386_v61  }
 0x293   :  { %v388_v62 = vpop.eup %387 }
 0x294   :  { %302 = vperm.xlu0 %376, %v388_v62  }
 0x2af   :  { %v228_v63 = vpop.f32.mrf.mxu0 }
 0x2b0   :  { %v280_v10 = vadd.f32 %v228_v63, %v181_v8 }
 0x2b1   :  { %v360_v0 = vpop.f32.mrf.mxu0 }
 0x2b3   :  { %v231_v1 = vpop.f32.mrf.mxu0  ;;  %v274_v2 = vpop.f32.mrf.mxu1 }
 0x2b4   :  { %v281_v14 = vadd.f32 %v274_v2, %v182_v12 }
 0x2b5   :  { %v361_v3 = vpop.f32.mrf.mxu0  ;;  %v366_v4 = vpop.f32.mrf.mxu1 }
 0x2b7   :  { %v277_v5 = vpop.f32.mrf.mxu1 }
 0x2b9   :  { %v367_v6 = vpop.f32.mrf.mxu1 }
 0x30b   :  { %v298_v11 = vpop.permute.xlu0 %297 }
 0x30c   :  { %v305_v13 = vmul.f32 %v298_v11, %v280_v10 }
 0x30e   :  { %307 = vst [vmem:[#allocation6] sm:$0xff] %v305_v13 }
 0x30f   :  { %v303_v15 = vpop.permute.xlu0 %302 }
 0x310   :  { %v306_v16 = vmul.f32 %v303_v15, %v281_v14 }
 0x312   :  { %308 = vst [vmem:[#allocation6 + $0x8] sm:$0xff] %v306_v16 }
 0x313   :  { %400 = shalt.err (!%p397_p4)
}
 0x314   :  { %s416_s22 = smov 128   ;;  %s417_s23 = smov 8  }
 0x315   :  { %320 = dma.vmem_to_hbm [thread:$0]  %s315_s20, 256, %s473_s3, [#allocation7], %s416_s22, %s416_s22, %s417_s23  }
 0x316   :  { %409 = dma.done.wait [#allocation7], 256  }
 0x317   :  { %410 = vsyncadd [#allocation7], 4294967040 }
 0x318   :  { %324 = vsyncpa [#allocation7], 1 }

</bundles_post_ra>
